<compile_context>
chip_gen: v5e
topology: v5e:2x2
jax: 0.10.0
libtpu: 0.0.40
codegen_flags: <defaults>
</compile_context>

<pallas_src>
import math

import jax
import jax.numpy as jnp
from jax.experimental import pallas as pl
from jax.experimental.pallas import tpu as pltpu


def _cdiv(a, b):
    return -(-a // b)


def _round_up(x, m):
    return _cdiv(x, m) * m


# ---------------------------------------------------------------------------
# Kernel body: one (tm, tn) output tile = h_tile @ Wh_slab + a_tile @ Wa_slab + b
# ---------------------------------------------------------------------------
def _token_projector_kernel(h_ref, a_ref, wh_ref, wa_ref, b_ref, o_ref):
    acc = jnp.dot(h_ref[...], wh_ref[...], preferred_element_type=jnp.float32)
    acc = acc + jnp.dot(a_ref[...], wa_ref[...],
                        preferred_element_type=jnp.float32)
    # TODO(synk): when d_action is tiny (<=16) the second dot is an
    # almost-empty MXU pass; folding both streams into one matmul would save
    # one MXU push/pop per grid step (modest win, skipped for clarity).
    o_ref[...] = (acc + b_ref[...]).astype(o_ref.dtype)


# ---------------------------------------------------------------------------
# One-time parameter relayout (hoisted out of the per-call path).
# ---------------------------------------------------------------------------
def prepare_token_projector_params(weight, bias, d_state, *, compute_dtype=None):
    """weight: (d_model, d_state + d_action) PyTorch nn.Linear layout;
    bias: (d_model,). Returns pre-transposed, lane-padded kernel params."""
    d_model, d_in = weight.shape
    d_action = d_in - d_state
    assert d_action > 0, "d_state must be smaller than weight in-features"
    d_model_p = _round_up(d_model, 128)            # lane-dense output tiles

    wt = jnp.asarray(weight).T                     # (d_in, d_model)
    if compute_dtype is not None:
        wt = wt.astype(compute_dtype)
    pad_n = d_model_p - d_model
    if pad_n:
        wt = jnp.pad(wt, ((0, 0), (0, pad_n)))
    wh = wt[:d_state]                              # (d_state,  d_model_p)
    wa = wt[d_state:]                              # (d_action, d_model_p)

    b = jnp.asarray(bias).astype(jnp.float32)      # bias stays f32
    if pad_n:
        b = jnp.pad(b, (0, pad_n))

    return dict(wh=wh, wa=wa, bias=b.reshape(1, d_model_p),
                d_state=d_state, d_action=d_action,
                d_model=d_model, d_model_p=d_model_p,
                compute_dtype=compute_dtype)


# ---------------------------------------------------------------------------
# pallas_call builder
# ---------------------------------------------------------------------------
_SINGLE_BUFFER_WEIGHTS_OK = None   # probed on first call, then cached


def _pallas_forward(h2, a2, wh, wa, b2, out_dtype, tm, tn, m_grid, n_grid,
                    single_buffer_weights):
    M_pad, d_state = h2.shape
    d_action = a2.shape[-1]
    d_model_pp = wh.shape[-1]
    d_in = d_state + d_action

    act_item = h2.dtype.itemsize
    w_item = wh.dtype.itemsize
    out_item = jnp.dtype(out_dtype).itemsize
    wbuf = 1 if single_buffer_weights else 2

    # Actual VMEM footprint: double-buffered h/a/out tiles + weight/bias slabs.
    vmem_bytes = (2 * tm * d_state * act_item
                  + 2 * tm * d_action * act_item
                  + 2 * tm * tn * out_item
                  + wbuf * d_state * tn * w_item
                  + wbuf * d_action * tn * w_item
                  + wbuf * tn * 4)
    vmem_limit = min(max(int(vmem_bytes * 1.5) + (2 << 20), 32 << 20),
                     100 << 20)

    if single_buffer_weights:
        wmode = pl.Buffered(buffer_count=1)
        wh_spec = pl.BlockSpec((d_state, tn), lambda j, i: (0, j),
                               pipeline_mode=wmode)
        wa_spec = pl.BlockSpec((d_action, tn), lambda j, i: (0, j),
                               pipeline_mode=wmode)
        b_spec = pl.BlockSpec((1, tn), lambda j, i: (0, j),
                              pipeline_mode=wmode)
    else:
        wh_spec = pl.BlockSpec((d_state, tn), lambda j, i: (0, j))
        wa_spec = pl.BlockSpec((d_action, tn), lambda j, i: (0, j))
        b_spec = pl.BlockSpec((1, tn), lambda j, i: (0, j))

    flops = 2 * M_pad * d_in * d_model_pp + M_pad * d_model_pp
    bytes_accessed = (n_grid * M_pad * d_in * act_item   # acts re-read per N tile
                      + d_in * d_model_pp * w_item       # weights streamed once
                      + M_pad * d_model_pp * out_item
                      + d_model_pp * 4)

    return pl.pallas_call(
        _token_projector_kernel,
        out_shape=jax.ShapeDtypeStruct((M_pad, d_model_pp), out_dtype),
        grid_spec=pltpu.PrefetchScalarGridSpec(
            num_scalar_prefetch=0,
            # N (d_model slabs) outer so each weight slab is fetched exactly
            # once; M (row tiles) inner streams the activations.
            grid=(n_grid, m_grid),
            in_specs=[
                pl.BlockSpec((tm, d_state), lambda j, i: (i, 0)),    # h rows
                pl.BlockSpec((tm, d_action), lambda j, i: (i, 0)),   # a rows
                wh_spec,                                             # Wh^T slab
                wa_spec,                                             # Wa^T slab
                b_spec,                                              # bias slab
            ],
            out_specs=pl.BlockSpec((tm, tn), lambda j, i: (i, j)),
        ),
        compiler_params=pltpu.CompilerParams(
            dimension_semantics=("parallel", "parallel"),
            vmem_limit_bytes=vmem_limit),
        cost_estimate=pl.CostEstimate(flops=int(flops), transcendentals=0,
                                      bytes_accessed=int(bytes_accessed)),
    )(h2, a2, wh, wa, b2)


# ---------------------------------------------------------------------------
# Per-call wrapper (no weight relayout here).
# ---------------------------------------------------------------------------
def token_projector_apply(params, h, a, *, tile_m=256, tile_n=512):
    d_state = params["d_state"]
    d_action = params["d_action"]
    d_model = params["d_model"]
    d_model_p = params["d_model_p"]
    compute_dtype = params["compute_dtype"]

    assert h.shape[-1] == d_state, "h feature-dim mismatch"
    assert a.shape[-1] == d_action, "a feature-dim mismatch"
    assert h.shape[:-1] == a.shape[:-1], "h/a leading dims mismatch"

    lead = h.shape[:-1]
    M = int(math.prod(lead)) if lead else 1
    out_dtype = h.dtype

    h2 = h.reshape(M, d_state)
    a2 = a.reshape(M, d_action)
    if compute_dtype is not None:
        h2 = h2.astype(compute_dtype)
        a2 = a2.astype(compute_dtype)

    wh, wa, b2 = params["wh"], params["wa"], params["bias"]

    # ---- N (d_model) tiling: 128-granular lane-dense slabs ------------------
    tn = _round_up(min(tile_n, d_model_p), 128)
    n_grid = _cdiv(d_model_p, tn)
    d_model_pp = n_grid * tn
    if d_model_pp != d_model_p:
        pad = d_model_pp - d_model_p
        wh = jnp.pad(wh, ((0, 0), (0, pad)))
        wa = jnp.pad(wa, ((0, 0), (0, pad)))
        b2 = jnp.pad(b2, ((0, 0), (0, pad)))

    # ---- M (row) tiling: tightest sublane-aligned tile, >=2 programs --------
    tm = min(tile_m, _round_up(M, 8))
    m_grid = _cdiv(M, tm)
    if m_grid * n_grid < 2 and M > 8:
        m_grid = 2                     # keep both v7x TensorCores busy
    tm = _round_up(_cdiv(M, m_grid), 8)
    m_grid = _cdiv(M, tm)
    M_pad = m_grid * tm
    if M_pad != M:
        h2 = jnp.pad(h2, ((0, M_pad - M), (0, 0)))
        a2 = jnp.pad(a2, ((0, M_pad - M), (0, 0)))

    global _SINGLE_BUFFER_WEIGHTS_OK
    if _SINGLE_BUFFER_WEIGHTS_OK is None:
        try:
            out = _pallas_forward(h2, a2, wh, wa, b2, out_dtype, tm, tn,
                                  m_grid, n_grid, True)
            out = jax.block_until_ready(out)
            _SINGLE_BUFFER_WEIGHTS_OK = True
        except Exception:
            # This JAX build rejects single-buffered specs -> default buffering.
            _SINGLE_BUFFER_WEIGHTS_OK = False
            out = _pallas_forward(h2, a2, wh, wa, b2, out_dtype, tm, tn,
                                  m_grid, n_grid, False)
    else:
        out = _pallas_forward(h2, a2, wh, wa, b2, out_dtype, tm, tn,
                              m_grid, n_grid, _SINGLE_BUFFER_WEIGHTS_OK)

    return out[:M, :d_model].reshape(*lead, d_model)


def token_projector(h, a, weight, bias, *, tile_m=256, tile_n=512,
                    compute_dtype=None):
    """One-shot convenience wrapper. Prefer prepare+apply so the weight
    relayout is hoisted out of the per-call path."""
    params = prepare_token_projector_params(weight, bias, h.shape[-1],
                                            compute_dtype=compute_dtype)
    return token_projector_apply(params, h, a, tile_m=tile_m, tile_n=tile_n)


if __name__ == "__main__":
    # Small shapes consistent with the module: h (B, T, d_state), a (B, T, d_action)
    B, T = 2, 8
    d_state, d_action, d_model = 24, 8, 32

    key = jax.random.PRNGKey(0)
    k_h, k_a, k_w, k_b = jax.random.split(key, 4)

    # Deterministic PyTorch nn.Linear-style uniform init.
    bound = 1.0 / math.sqrt(d_state + d_action)
    weight = jax.random.uniform(k_w, (d_model, d_state + d_action),
                                jnp.float32, -bound, bound)
    bias = jax.random.uniform(k_b, (d_model,), jnp.float32, -bound, bound)

    h = jax.random.normal(k_h, (B, T, d_state), jnp.float32)
    a = jax.random.normal(k_a, (B, T, d_action), jnp.float32)

    # Hoisted path: weight relayout done once, reused across forward calls.
    params = prepare_token_projector_params(weight, bias, d_state)
    out = token_projector_apply(params, h, a)
    out = jax.block_until_ready(out)

    # Pure-JAX reference mirroring the PyTorch forward exactly.
    ref = jnp.concatenate([h, a], axis=-1) @ weight.T + bias
    assert out.shape == (B, T, d_model)
    assert jnp.allclose(out, ref, atol=1e-5, rtol=1e-5), "mismatch vs reference"
    print("KERNEL_OK")
</pallas_src>

<mosaic_0001>
module attributes {stable_mosaic.version = 11 : i64} {
  func.func @_token_projector_kernel(%arg0: i32, %arg1: i32, %arg2: memref<8x24xf32, #tpu.memory_space<vmem>>, %arg3: memref<8x8xf32, #tpu.memory_space<vmem>>, %arg4: memref<24x128xf32, #tpu.memory_space<vmem>>, %arg5: memref<8x128xf32, #tpu.memory_space<vmem>>, %arg6: memref<1x128xf32, #tpu.memory_space<vmem>>, %arg7: memref<8x128xf32, #tpu.memory_space<vmem>>) attributes {dimension_semantics = [#tpu.dimension_semantics<parallel>, #tpu.dimension_semantics<parallel>], iteration_bounds = array<i64: 1, 2>, scalar_prefetch = 0 : i64, scratch_operands = 0 : i64, tpu.core_type = #tpu.core_type<tc>, window_params = [{transform_indices = @transform_0, window_bounds = array<i64: 8, 24>}, {transform_indices = @transform_1, window_bounds = array<i64: 8, 8>}, {pipeline_mode = #tpu.pipeline_mode<synchronous>, transform_indices = @transform_2, window_bounds = array<i64: 24, 128>}, {pipeline_mode = #tpu.pipeline_mode<synchronous>, transform_indices = @transform_3, window_bounds = array<i64: 8, 128>}, {pipeline_mode = #tpu.pipeline_mode<synchronous>, transform_indices = @transform_4, window_bounds = array<i64: 1, 128>}, {transform_indices = @transform_5, window_bounds = array<i64: 8, 128>}]} {
    %c0 = arith.constant 0 : index
    %c0_0 = arith.constant 0 : index
    %0 = vector.load %arg2[%c0, %c0_0] : memref<8x24xf32, #tpu.memory_space<vmem>>, vector<8x24xf32>
    %c0_1 = arith.constant 0 : index
    %c0_2 = arith.constant 0 : index
    %1 = vector.load %arg4[%c0_1, %c0_2] : memref<24x128xf32, #tpu.memory_space<vmem>>, vector<24x128xf32>
    %cst = arith.constant dense<0.000000e+00> : vector<8x128xf32>
    %2 = tpu.matmul %0, %1, %cst {dimension_numbers = #tpu.dot_dimension_numbers<[1], [0], [0], [1], [0, 0, 1, 1], [], []>} : vector<8x24xf32>, vector<24x128xf32>, vector<8x128xf32> -> vector<8x128xf32>
    %c0_3 = arith.constant 0 : index
    %c0_4 = arith.constant 0 : index
    %3 = vector.load %arg3[%c0_3, %c0_4] : memref<8x8xf32, #tpu.memory_space<vmem>>, vector<8x8xf32>
    %c0_5 = arith.constant 0 : index
    %c0_6 = arith.constant 0 : index
    %4 = vector.load %arg5[%c0_5, %c0_6] : memref<8x128xf32, #tpu.memory_space<vmem>>, vector<8x128xf32>
    %cst_7 = arith.constant dense<0.000000e+00> : vector<8x128xf32>
    %5 = tpu.matmul %3, %4, %cst_7 {dimension_numbers = #tpu.dot_dimension_numbers<[1], [0], [0], [1], [0, 0, 1, 1], [], []>} : vector<8x8xf32>, vector<8x128xf32>, vector<8x128xf32> -> vector<8x128xf32>
    %6 = arith.addf %2, %5 : vector<8x128xf32>
    %c0_8 = arith.constant 0 : index
    %c0_9 = arith.constant 0 : index
    %7 = vector.load %arg6[%c0_8, %c0_9] : memref<1x128xf32, #tpu.memory_space<vmem>>, vector<1x128xf32>
    %8 = vector.broadcast %7 : vector<1x128xf32> to vector<8x128xf32>
    %9 = arith.addf %6, %8 : vector<8x128xf32>
    %c0_10 = arith.constant 0 : index
    %c0_11 = arith.constant 0 : index
    %10 = vector.load %arg7[%c0_10, %c0_11] : memref<8x128xf32, #tpu.memory_space<vmem>>, vector<8x128xf32>
    tpu.vector_store %arg7[%c0_10, %c0_11], %9 {strides = array<i32>} : memref<8x128xf32, #tpu.memory_space<vmem>>, vector<8x128xf32>,
    return
  }
  func.func @transform_0(%arg0: i32, %arg1: i32) -> (i32, i32) {
    %c0_i32 = arith.constant 0 : i32
    %c0_i32_0 = arith.constant 0 : i32
    return %arg1, %c0_i32 : i32, i32
  }
  func.func @transform_1(%arg0: i32, %arg1: i32) -> (i32, i32) {
    %c0_i32 = arith.constant 0 : i32
    %c0_i32_0 = arith.constant 0 : i32
    return %arg1, %c0_i32 : i32, i32
  }
  func.func @transform_2(%arg0: i32, %arg1: i32) -> (i32, i32) {
    %c0_i32 = arith.constant 0 : i32
    %c0_i32_0 = arith.constant 0 : i32
    return %c0_i32, %arg0 : i32, i32
  }
  func.func @transform_3(%arg0: i32, %arg1: i32) -> (i32, i32) {
    %c0_i32 = arith.constant 0 : i32
    %c0_i32_0 = arith.constant 0 : i32
    return %c0_i32, %arg0 : i32, i32
  }
  func.func @transform_4(%arg0: i32, %arg1: i32) -> (i32, i32) {
    %c0_i32 = arith.constant 0 : i32
    %c0_i32_0 = arith.constant 0 : i32
    return %c0_i32, %arg0 : i32, i32
  }
  func.func @transform_5(%arg0: i32, %arg1: i32) -> (i32, i32) {
    %c0_i32 = arith.constant 0 : i32
    return %arg1, %arg0 : i32, i32
  }
}

module attributes {stable_mosaic.version = 11 : i64} {
  func.func @_token_projector_kernel(%arg0: i32, %arg1: i32, %arg2: memref<8x24xf32, #tpu.memory_space<vmem>>, %arg3: memref<8x8xf32, #tpu.memory_space<vmem>>, %arg4: memref<24x128xf32, #tpu.memory_space<vmem>>, %arg5: memref<8x128xf32, #tpu.memory_space<vmem>>, %arg6: memref<1x128xf32, #tpu.memory_space<vmem>>, %arg7: memref<8x128xf32, #tpu.memory_space<vmem>>) attributes {dimension_semantics = [#tpu.dimension_semantics<parallel>, #tpu.dimension_semantics<parallel>], iteration_bounds = array<i64: 1, 2>, scalar_prefetch = 0 : i64, scratch_operands = 0 : i64, tpu.core_type = #tpu.core_type<tc>, window_params = [{transform_indices = @transform_0, window_bounds = array<i64: 8, 24>}, {transform_indices = @transform_1, window_bounds = array<i64: 8, 8>}, {transform_indices = @transform_2, window_bounds = array<i64: 24, 128>}, {transform_indices = @transform_3, window_bounds = array<i64: 8, 128>}, {transform_indices = @transform_4, window_bounds = array<i64: 1, 128>}, {transform_indices = @transform_5, window_bounds = array<i64: 8, 128>}]} {
    %c0 = arith.constant 0 : index
    %c0_0 = arith.constant 0 : index
    %0 = vector.load %arg2[%c0, %c0_0] : memref<8x24xf32, #tpu.memory_space<vmem>>, vector<8x24xf32>
    %c0_1 = arith.constant 0 : index
    %c0_2 = arith.constant 0 : index
    %1 = vector.load %arg4[%c0_1, %c0_2] : memref<24x128xf32, #tpu.memory_space<vmem>>, vector<24x128xf32>
    %cst = arith.constant dense<0.000000e+00> : vector<8x128xf32>
    %2 = tpu.matmul %0, %1, %cst {dimension_numbers = #tpu.dot_dimension_numbers<[1], [0], [0], [1], [0, 0, 1, 1], [], []>} : vector<8x24xf32>, vector<24x128xf32>, vector<8x128xf32> -> vector<8x128xf32>
    %c0_3 = arith.constant 0 : index
    %c0_4 = arith.constant 0 : index
    %3 = vector.load %arg3[%c0_3, %c0_4] : memref<8x8xf32, #tpu.memory_space<vmem>>, vector<8x8xf32>
    %c0_5 = arith.constant 0 : index
    %c0_6 = arith.constant 0 : index
    %4 = vector.load %arg5[%c0_5, %c0_6] : memref<8x128xf32, #tpu.memory_space<vmem>>, vector<8x128xf32>
    %cst_7 = arith.constant dense<0.000000e+00> : vector<8x128xf32>
    %5 = tpu.matmul %3, %4, %cst_7 {dimension_numbers = #tpu.dot_dimension_numbers<[1], [0], [0], [1], [0, 0, 1, 1], [], []>} : vector<8x8xf32>, vector<8x128xf32>, vector<8x128xf32> -> vector<8x128xf32>
    %6 = arith.addf %2, %5 : vector<8x128xf32>
    %c0_8 = arith.constant 0 : index
    %c0_9 = arith.constant 0 : index
    %7 = vector.load %arg6[%c0_8, %c0_9] : memref<1x128xf32, #tpu.memory_space<vmem>>, vector<1x128xf32>
    %8 = vector.broadcast %7 : vector<1x128xf32> to vector<8x128xf32>
    %9 = arith.addf %6, %8 : vector<8x128xf32>
    %c0_10 = arith.constant 0 : index
    %c0_11 = arith.constant 0 : index
    %10 = vector.load %arg7[%c0_10, %c0_11] : memref<8x128xf32, #tpu.memory_space<vmem>>, vector<8x128xf32>
    tpu.vector_store %arg7[%c0_10, %c0_11], %9 {strides = array<i32>} : memref<8x128xf32, #tpu.memory_space<vmem>>, vector<8x128xf32>,
    return
  }
  func.func @transform_0(%arg0: i32, %arg1: i32) -> (i32, i32) {
    %c0_i32 = arith.constant 0 : i32
    %c0_i32_0 = arith.constant 0 : i32
    return %arg1, %c0_i32 : i32, i32
  }
  func.func @transform_1(%arg0: i32, %arg1: i32) -> (i32, i32) {
    %c0_i32 = arith.constant 0 : i32
    %c0_i32_0 = arith.constant 0 : i32
    return %arg1, %c0_i32 : i32, i32
  }
  func.func @transform_2(%arg0: i32, %arg1: i32) -> (i32, i32) {
    %c0_i32 = arith.constant 0 : i32
    %c0_i32_0 = arith.constant 0 : i32
    return %c0_i32, %arg0 : i32, i32
  }
  func.func @transform_3(%arg0: i32, %arg1: i32) -> (i32, i32) {
    %c0_i32 = arith.constant 0 : i32
    %c0_i32_0 = arith.constant 0 : i32
    return %c0_i32, %arg0 : i32, i32
  }
  func.func @transform_4(%arg0: i32, %arg1: i32) -> (i32, i32) {
    %c0_i32 = arith.constant 0 : i32
    %c0_i32_0 = arith.constant 0 : i32
    return %c0_i32, %arg0 : i32, i32
  }
  func.func @transform_5(%arg0: i32, %arg1: i32) -> (i32, i32) {
    %c0_i32 = arith.constant 0 : i32
    return %arg1, %arg0 : i32, i32
  }
}

</mosaic_0001>

<bundles_post_ra>
// kernel: tpu_custom_call.1
= control target key start
LH: loop header
LB: loop body
LE: loop exit
PB: predicated region body
PF: predicated region fallthrough
CT: control target
= control target key end

     0   :  { %s972_s0 = inlined_call_operand.hbm [shape: f32[16,24], index: 0, kind: input, shape index: {}]   ;;  %s973_s1 = inlined_call_operand.vmem [shape: f32[16,8], index: 1, kind: input, shape index: {}]   ;;  %s974_s2 = inlined_call_operand.vmem [shape: f32[24,128], index: 2, kind: input, shape index: {}]   ;;  %s975_s3 = inlined_call_operand.hbm [shape: f32[8,128], index: 3, kind: input, shape index: {}]   ;;  %s976_s4 = inlined_call_operand.vmem [shape: f32[1,128], index: 4, kind: input, shape index: {}]   ;;  %s977_s5 = inlined_call_operand.hbm [shape: f32[16,128], index: 5, kind: output, shape index: {}]  }
   0x1   :  { %978 = sst [smem:[#allocation11_spill]] %s975_s3 }
   0x2   :  { %10 = vsyncpa [#allocation3], 0 }
   0x3   :  { %12 = vsyncpa [#allocation3 + $0x1], 0 }
   0x4   :  { %13 = vsyncpa [#allocation6], 0 }
   0x5   :  { %14 = vsyncpa [#allocation4], 0 }
   0x6   :  { %16 = vsyncpa [#allocation4 + $0x1], 0  ;;  %s806_s18 = smov 0   ;;  %s808_s19 = smov 0  }
   0x7   :  { %s810_s20 = smov 0   ;;  %s812_s21 = smov 0  }
   0x8   :  { %s814_s22 = smov 0   ;;  %s816_s23 = smov 0  }
   0x9 LB: > { %s533_s24 = sadd.s32 4294967295, %s773_s23   ;;  %s534_s25 = sadd.s32 4294967294, %s773_s23   ;;  %s773_s23 = sphi %s816_s23, %s22_s23   ;;  %s769_s22 = sphi %s814_s22, %s991_s22   ;;  %s765_s21 = sphi %s812_s21, %s990_s21   ;;  %s761_s20 = sphi %s810_s20, %s989_s20   ;;  %s757_s19 = sphi %s808_s19, %s988_s19   ;;  %s753_s18 = sphi %s806_s18, %s987_s18  }
   0xa   : > { %p54_p0 = scmp.ne.s32.totalorder %s757_s19, %s753_s18  ;;  %p840_p1 = scmp.eq.s32.totalorder %s533_s24, 0 }
   0xb   : > { %p844_p2 = scmp.eq.s32.totalorder %s533_s24, 1  ;;  %p190_p3 = scmp.eq.s32.totalorder %s534_s25, 1 }
   0xc   : > { %p850_p4 = por %p840_p1, %p54_p0  ;;  %p535_p5 = scmp.ge.s32.totalorder %s773_s23, 1 }
   0xd   : > { %p855_p6 = por %p190_p3, %p54_p0  ;;  %p197_p7 = scmp.lt.s32.totalorder %s773_s23, 3 }
   0xe   : > { %s983_s3 = sld [smem:[#allocation11_spill]]  ;;  %p539_p9 = scmp.ge.s32.totalorder %s773_s23, 2 }
   0xf   : > { %p863_p8 = pnand %p535_p5, %p197_p7  ;;  %s775_s9 = smov [#allocation5]  }
  0x10   : > { %s220_s10 = sshll.u32 %s775_s9, 4  ;;  %s31_s11 = sadd.s32 1, %s769_s22  ;;  %s221_s10 = int_to_ptr.vmem [resolvable:$true] %s220_s10 }
  0x11   : > { %p561_p10 = pneg %p863_p8  ;;  %p32_p12 = scmp.ge.s32.totalorder %s31_s11, 2 }
  0x12   : > { %s41_s12 = sadd.s32 1, %s761_s20  ;;  %p48_p13 = scmp.ne.s32.totalorder %s761_s20, %s757_s19 }
  0x13   : > { %p562_p11 = pnand %p561_p10, %p840_p1  ;;  %p49_p0 = scmp.eq.s32.totalorder %s773_s23, 0 }
  0x14   : > { %s218_s7 = sshll.u32 %s983_s3, 4  ;;  %s993_s11 = smov (%p32_p12, %s31_s11), 0  ;;  %s219_s7 = int_to_ptr.hbm [resolvable:$true] %s218_s7 }
  0x15   : > { %564 = dma.hbm_to_vmem [thread:$0]  (!%p562_p11), %s219_s7, 128, %s221_s10, [#allocation6]  }
  0x16   : > { %p879_p3 = por %p49_p0, %p48_p13  ;;  %p885_p5 = por %p844_p2, %p48_p13 }
  0x17   : > { %s38_s15 = ssub.s32 %s769_s22, %s993_s11  ;;  %p574_p7 = scmp.lt.s32.totalorder %s773_s23, 2 }
  0x18   : > { %p39_p10 = scmp.eq.s32.totalorder %s38_s15, 0  ;;  %s237_s16 = sand.u32 1, %s761_s20  }
  0x19   : > { %s540_s17 = sshll.u32 %s237_s16, 3  ;;  %s541_s25 = sshll.u32 %s769_s22, 3 }
  0x1a   : > { %s894_s24 = scalar_select %p39_p10, %s761_s20, %s41_s12  }
  0x1b   : > { %s245_s7 = scalar_lea.hbm %s972_s0, %s541_s25  ;;  %s241_s9 = scalar_lea.vmem [#allocation2], %s540_s17 }
  0x1c   : > { %s249_s10 = sshll.u32 %s241_s9, 4  ;;  %s247_s27 = sshll.u32 %s245_s7, 4  ;;  %s250_s10 = int_to_ptr.vmem [resolvable:$true] %s249_s10  ;;  %s248_s27 = int_to_ptr.hbm [resolvable:$true] %s247_s27 }
  0x1d   : > { %p566_p2 = pnand %p574_p7, %p879_p3  ;;  %s238_s3 = scalar_lea.sflag [#allocation3], %s237_s16 }
  0x1e   : > { %265 = sbr.rel (%p863_p8) target bundleno = 178 (0xb2), region = 40  ;;  %s905_s12 = sand.u32 (!%p863_p8), 1, %s757_s19  }
  0x1f   : > { %568 = dma.hbm_to_vmem [thread:$0]  (!%p566_p2), %s248_s27, 128, %s250_s10, %s238_s3  }
  0x20   : > { %s543_s15 = sshll.u32 (!%p863_p8), %s905_s12, 3  ;;  %s268_s25 = scalar_lea.sflag (!%p863_p8), [#allocation3], %s905_s12 }
  0x21   : > { %s271_s17 = scalar_lea.vmem (!%p863_p8), [#allocation2], %s543_s15 }
  0x23   : > { %740 = dma.done.wait (%p850_p4), %s268_s25, 128  }
  0x24   : > { %742 = vsyncadd (%p850_p4), %s268_s25, 4294967168 }
  0x25   : > { %744 = dma.done.wait (%p840_p1), [#allocation6], 128  }
  0x26   : > { %746 = vsyncadd (%p840_p1), [#allocation6], 4294967168  ;;  %p315_p8 = scmp.lt.s32.totalorder %s765_s21, 1  ;;  %vm332_vm0 = vcmask 64512   ;;  %v329_v0 = vld [vmem:[%s974_s2 + $0x10] sm:$0xff]  ;;  %v328_v1 = vld [vmem:[%s974_s2 + $0x8] sm:$0xff] }
  0x27   : > { %v331_v2 = vld [vmem:[#allocation5] sm:$0xff]  ;;  %373 = vmatpush.msra.mxu1 %v329_v0  ;;  %v327_v4 = vld [vmem:[%s974_s2] sm:$0xff]  ;;  %vm356_vm1 = vcmask 195584   ;;  %s550_s27 = sshll.u32 %s765_s21, 3  ;;  %s707_s10 = scalar_lea.hbm %s977_s5, 16 }
  0x28   : > { %s316_s3 = scalar_select %p315_p8, %s765_s21, 1  ;;  %351 = vmatpush.msra.mxu0 %v331_v2  ;;  %v326_v5 = vld [vmem:[%s271_s17] sm:$0xff] }
  0x29   : > { %374 = vmatpush.msra.mxu1 %v328_v1  ;;  %v626_v7 = vld [vmem:[%s976_s4] ss:$0 sm:$0xff]  ;;  %s387_s21 = scalar_lea.sflag [#allocation4], %s905_s12 }
  0x2a   : > { %s546_s8 = sshll.u32 %s316_s3, 3 }
  0x2b   : > { %s318_s30 = scalar_lea.vmem %s973_s1, %s546_s8  ;;  %375 = vmatpush.msra.mxu1 %v327_v4  ;;  %s398_s8 = scalar_lea.hbm %s977_s5, %s550_s27 }
  0x2c   : > { %v330_v3 = vld [vmem:[%s318_s30] sm:$0xff]  ;;  %548 = vmatmul.msk.f32.vlgmr.msra.gmra.mxu1 %vm356_vm1, %v326_v5  ;;  %s314_s30 = scalar_lea.vmem [#allocation7], %s543_s15  ;;  %s402_s28 = sshll.u32 %s398_s8, 4  ;;  %s403_s28 = int_to_ptr.hbm [resolvable:$true] %s402_s28 }
  0x2d   : > { %547 = vmatmul.msk.f32.vlgmr.msra.gmra.mxu0 %vm332_vm0, %v330_v3  ;;  %s400_s6 = sshll.u32 %s314_s30, 4  ;;  %s701_s17 = sshra.s32 %s403_s28, 4  ;;  %s401_s6 = int_to_ptr.vmem [resolvable:$true] %s400_s6  ;;  %s702_s17 = int_to_ptr.hbm [resolvable:$true] %s701_s17 }
  0x2e   : > { %s703_s7 = scalar_lea.hbm %s702_s17, 8  ;;  %p708_p12 = scmp.lt.s32.totalorder %s702_s17, %s977_s5 }
  0x2f   : > { %p704_p1 = scmp.ne.s32.totalorder %s702_s17, %s703_s7  ;;  %p709_p13 = scmp.lt.s32.totalorder %s707_s10, %s703_s7 }
  0x31   : > { %p705_p4 = pnand %p704_p1, %p885_p5  ;;  %p710_p0 = por %p709_p13, %p708_p12 }
  0x33   : > { %p706_p11 = pneg %p705_p4 }
  0x35   : > { %p711_p3 = pnand %p710_p0, %p706_p11 }
  0xa9   : > { %v377_v8 = vpop.f32.mrf.mxu1 }
  0xaa   : > { %v353_v6 = vpop.f32.mrf.mxu0 }
  0xab   : > { %v378_v9 = vadd.f32 %v377_v8, %v353_v6 }
  0xad   : > { %v384_v10 = vadd.f32 %v626_v7, %v378_v9 }
  0xaf   : > { %385 = vst [vmem:[%s314_s30] sm:$0xff] %v384_v10 }
  0xb0   : > { %714 = shalt.err (!%p711_p3)
}
  0xb1   : > { %559 = dma.vmem_to_hbm [thread:$0]  (%p885_p5), %s401_s6, 128, %s403_s28, %s387_s21  }
  0xb2 PF: > { %s414_s12 = sand.u32 1, %s753_s18   ;;  %p570_p7 = pnand %p539_p9, %p855_p6 }
  0xb3   : > { %s415_s25 = scalar_lea.sflag [#allocation4], %s414_s12 }
  0xb4   : > { %p571_p10 = pneg %p570_p7 }
  0xb6   : > { %748 = dma.done.wait (%p571_p10), %s415_s25, 128  }
  0xb7   : > { %750 = vsyncadd (%p571_p10), %s415_s25, 4294967168  ;;  %s22_s23 = sadd.s32 1, %s773_s23   ;;  %s987_s18 = smov %s757_s19 }
  0xb8   : > { %p19_p2 = scmp.ge.s32.totalorder %s22_s23, 4   ;;  %s988_s19 = smov %s761_s20 }
  0xb9   : > { %s989_s20 = smov %s894_s24  ;;  %s990_s21 = smov %s769_s22 }
  0xba   : > { %s991_s22 = smov %s993_s11  ;;  %21 = sbr.rel (!%p19_p2) target bundleno = 9 (0x9), region = 99 }
  0xbf   :  { %421 = vsyncpa [#allocation3], 1 }
  0xc0   :  { %423 = vsyncpa [#allocation3 + $0x1], 1 }
  0xc1   :  { %424 = vsyncpa [#allocation6], 1 }
  0xc2   :  { %425 = vsyncpa [#allocation4], 1 }
  0xc3   :  { %427 = vsyncpa [#allocation4 + $0x1], 1 }

// kernel: tpu_custom_call.1
= control target key start
LH: loop header
LB: loop body
LE: loop exit
PB: predicated region body
PF: predicated region fallthrough
CT: control target
= control target key end

     0   :  { %s972_s0 = inlined_call_operand.hbm [shape: f32[16,24], index: 0, kind: input, shape index: {}]   ;;  %s973_s1 = inlined_call_operand.vmem [shape: f32[16,8], index: 1, kind: input, shape index: {}]   ;;  %s974_s2 = inlined_call_operand.vmem [shape: f32[24,128], index: 2, kind: input, shape index: {}]   ;;  %s975_s3 = inlined_call_operand.hbm [shape: f32[8,128], index: 3, kind: input, shape index: {}]   ;;  %s976_s4 = inlined_call_operand.vmem [shape: f32[1,128], index: 4, kind: input, shape index: {}]   ;;  %s977_s5 = inlined_call_operand.hbm [shape: f32[16,128], index: 5, kind: output, shape index: {}]  }
   0x1   :  { %978 = sst [smem:[#allocation11_spill]] %s975_s3 }
   0x2   :  { %10 = vsyncpa [#allocation3], 0 }
   0x3   :  { %12 = vsyncpa [#allocation3 + $0x1], 0 }
   0x4   :  { %13 = vsyncpa [#allocation6], 0 }
   0x5   :  { %14 = vsyncpa [#allocation4], 0 }
   0x6   :  { %16 = vsyncpa [#allocation4 + $0x1], 0  ;;  %s806_s18 = smov 0   ;;  %s808_s19 = smov 0  }
   0x7   :  { %s810_s20 = smov 0   ;;  %s812_s21 = smov 0  }
   0x8   :  { %s814_s22 = smov 0   ;;  %s816_s23 = smov 0  }
   0x9 LB: > { %s533_s24 = sadd.s32 4294967295, %s773_s23   ;;  %s534_s25 = sadd.s32 4294967294, %s773_s23   ;;  %s773_s23 = sphi %s816_s23, %s22_s23   ;;  %s769_s22 = sphi %s814_s22, %s991_s22   ;;  %s765_s21 = sphi %s812_s21, %s990_s21   ;;  %s761_s20 = sphi %s810_s20, %s989_s20   ;;  %s757_s19 = sphi %s808_s19, %s988_s19   ;;  %s753_s18 = sphi %s806_s18, %s987_s18  }
   0xa   : > { %p54_p0 = scmp.ne.s32.totalorder %s757_s19, %s753_s18  ;;  %p840_p1 = scmp.eq.s32.totalorder %s533_s24, 0 }
   0xb   : > { %p844_p2 = scmp.eq.s32.totalorder %s533_s24, 1  ;;  %p190_p3 = scmp.eq.s32.totalorder %s534_s25, 1 }
   0xc   : > { %p850_p4 = por %p840_p1, %p54_p0  ;;  %p535_p5 = scmp.ge.s32.totalorder %s773_s23, 1 }
   0xd   : > { %p855_p6 = por %p190_p3, %p54_p0  ;;  %p197_p7 = scmp.lt.s32.totalorder %s773_s23, 3 }
   0xe   : > { %s983_s3 = sld [smem:[#allocation11_spill]]  ;;  %p539_p9 = scmp.ge.s32.totalorder %s773_s23, 2 }
   0xf   : > { %p863_p8 = pnand %p535_p5, %p197_p7  ;;  %s775_s9 = smov [#allocation5]  }
  0x10   : > { %s220_s10 = sshll.u32 %s775_s9, 4  ;;  %s31_s11 = sadd.s32 1, %s769_s22  ;;  %s221_s10 = int_to_ptr.vmem [resolvable:$true] %s220_s10 }
  0x11   : > { %p561_p10 = pneg %p863_p8  ;;  %p32_p12 = scmp.ge.s32.totalorder %s31_s11, 2 }
  0x12   : > { %s41_s12 = sadd.s32 1, %s761_s20  ;;  %p48_p13 = scmp.ne.s32.totalorder %s761_s20, %s757_s19 }
  0x13   : > { %p562_p11 = pnand %p561_p10, %p840_p1  ;;  %p49_p0 = scmp.eq.s32.totalorder %s773_s23, 0 }
  0x14   : > { %s218_s7 = sshll.u32 %s983_s3, 4  ;;  %s993_s11 = smov (%p32_p12, %s31_s11), 0  ;;  %s219_s7 = int_to_ptr.hbm [resolvable:$true] %s218_s7 }
  0x15   : > { %564 = dma.hbm_to_vmem [thread:$0]  (!%p562_p11), %s219_s7, 128, %s221_s10, [#allocation6]  }
  0x16   : > { %p879_p3 = por %p49_p0, %p48_p13  ;;  %p885_p5 = por %p844_p2, %p48_p13 }
  0x17   : > { %s38_s15 = ssub.s32 %s769_s22, %s993_s11  ;;  %p574_p7 = scmp.lt.s32.totalorder %s773_s23, 2 }
  0x18   : > { %p39_p10 = scmp.eq.s32.totalorder %s38_s15, 0  ;;  %s237_s16 = sand.u32 1, %s761_s20  }
  0x19   : > { %s540_s17 = sshll.u32 %s237_s16, 3  ;;  %s541_s25 = sshll.u32 %s769_s22, 3 }
  0x1a   : > { %s894_s24 = scalar_select %p39_p10, %s761_s20, %s41_s12  }
  0x1b   : > { %s245_s7 = scalar_lea.hbm %s972_s0, %s541_s25  ;;  %s241_s9 = scalar_lea.vmem [#allocation2], %s540_s17 }
  0x1c   : > { %s249_s10 = sshll.u32 %s241_s9, 4  ;;  %s247_s27 = sshll.u32 %s245_s7, 4  ;;  %s250_s10 = int_to_ptr.vmem [resolvable:$true] %s249_s10  ;;  %s248_s27 = int_to_ptr.hbm [resolvable:$true] %s247_s27 }
  0x1d   : > { %p566_p2 = pnand %p574_p7, %p879_p3  ;;  %s238_s3 = scalar_lea.sflag [#allocation3], %s237_s16 }
  0x1e   : > { %265 = sbr.rel (%p863_p8) target bundleno = 178 (0xb2), region = 40  ;;  %s905_s12 = sand.u32 (!%p863_p8), 1, %s757_s19  }
  0x1f   : > { %568 = dma.hbm_to_vmem [thread:$0]  (!%p566_p2), %s248_s27, 128, %s250_s10, %s238_s3  }
  0x20   : > { %s543_s15 = sshll.u32 (!%p863_p8), %s905_s12, 3  ;;  %s268_s25 = scalar_lea.sflag (!%p863_p8), [#allocation3], %s905_s12 }
  0x21   : > { %s271_s17 = scalar_lea.vmem (!%p863_p8), [#allocation2], %s543_s15 }
  0x23   : > { %740 = dma.done.wait (%p850_p4), %s268_s25, 128  }
  0x24   : > { %742 = vsyncadd (%p850_p4), %s268_s25, 4294967168 }
  0x25   : > { %744 = dma.done.wait (%p840_p1), [#allocation6], 128  }
  0x26   : > { %746 = vsyncadd (%p840_p1), [#allocation6], 4294967168  ;;  %p315_p8 = scmp.lt.s32.totalorder %s765_s21, 1  ;;  %vm332_vm0 = vcmask 64512   ;;  %v329_v0 = vld [vmem:[%s974_s2 + $0x10] sm:$0xff]  ;;  %v328_v1 = vld [vmem:[%s974_s2 + $0x8] sm:$0xff] }
  0x27   : > { %v331_v2 = vld [vmem:[#allocation5] sm:$0xff]  ;;  %373 = vmatpush.msra.mxu1 %v329_v0  ;;  %v327_v4 = vld [vmem:[%s974_s2] sm:$0xff]  ;;  %vm356_vm1 = vcmask 195584   ;;  %s550_s27 = sshll.u32 %s765_s21, 3  ;;  %s707_s10 = scalar_lea.hbm %s977_s5, 16 }
  0x28   : > { %s316_s3 = scalar_select %p315_p8, %s765_s21, 1  ;;  %351 = vmatpush.msra.mxu0 %v331_v2  ;;  %v326_v5 = vld [vmem:[%s271_s17] sm:$0xff] }
  0x29   : > { %374 = vmatpush.msra.mxu1 %v328_v1  ;;  %v626_v7 = vld [vmem:[%s976_s4] ss:$0 sm:$0xff]  ;;  %s387_s21 = scalar_lea.sflag [#allocation4], %s905_s12 }
  0x2a   : > { %s546_s8 = sshll.u32 %s316_s3, 3 }
  0x2b   : > { %s318_s30 = scalar_lea.vmem %s973_s1, %s546_s8  ;;  %375 = vmatpush.msra.mxu1 %v327_v4  ;;  %s398_s8 = scalar_lea.hbm %s977_s5, %s550_s27 }
  0x2c   : > { %v330_v3 = vld [vmem:[%s318_s30] sm:$0xff]  ;;  %548 = vmatmul.msk.f32.vlgmr.msra.gmra.mxu1 %vm356_vm1, %v326_v5  ;;  %s314_s30 = scalar_lea.vmem [#allocation7], %s543_s15  ;;  %s402_s28 = sshll.u32 %s398_s8, 4  ;;  %s403_s28 = int_to_ptr.hbm [resolvable:$true] %s402_s28 }
  0x2d   : > { %547 = vmatmul.msk.f32.vlgmr.msra.gmra.mxu0 %vm332_vm0, %v330_v3  ;;  %s400_s6 = sshll.u32 %s314_s30, 4  ;;  %s701_s17 = sshra.s32 %s403_s28, 4  ;;  %s401_s6 = int_to_ptr.vmem [resolvable:$true] %s400_s6  ;;  %s702_s17 = int_to_ptr.hbm [resolvable:$true] %s701_s17 }
  0x2e   : > { %s703_s7 = scalar_lea.hbm %s702_s17, 8  ;;  %p708_p12 = scmp.lt.s32.totalorder %s702_s17, %s977_s5 }
  0x2f   : > { %p704_p1 = scmp.ne.s32.totalorder %s702_s17, %s703_s7  ;;  %p709_p13 = scmp.lt.s32.totalorder %s707_s10, %s703_s7 }
  0x31   : > { %p705_p4 = pnand %p704_p1, %p885_p5  ;;  %p710_p0 = por %p709_p13, %p708_p12 }
  0x33   : > { %p706_p11 = pneg %p705_p4 }
  0x35   : > { %p711_p3 = pnand %p710_p0, %p706_p11 }
  0xa9   : > { %v377_v8 = vpop.f32.mrf.mxu1 }
  0xaa   : > { %v353_v6 = vpop.f32.mrf.mxu0 }
  0xab   : > { %v378_v9 = vadd.f32 %v377_v8, %v353_v6 }
  0xad   : > { %v384_v10 = vadd.f32 %v626_v7, %v378_v9 }
  0xaf   : > { %385 = vst [vmem:[%s314_s30] sm:$0xff] %v384_v10 }
  0xb0   : > { %714 = shalt.err (!%p711_p3)
}
  0xb1   : > { %559 = dma.vmem_to_hbm [thread:$0]  (%p885_p5), %s401_s6, 128, %s403_s28, %s387_s21  }
  0xb2 PF: > { %s414_s12 = sand.u32 1, %s753_s18   ;;  %p570_p7 = pnand %p539_p9, %p855_p6 }
  0xb3   : > { %s415_s25 = scalar_lea.sflag [#allocation4], %s414_s12 }
  0xb4   : > { %p571_p10 = pneg %p570_p7 }
  0xb6   : > { %748 = dma.done.wait (%p571_p10), %s415_s25, 128  }
  0xb7   : > { %750 = vsyncadd (%p571_p10), %s415_s25, 4294967168  ;;  %s22_s23 = sadd.s32 1, %s773_s23   ;;  %s987_s18 = smov %s757_s19 }
  0xb8   : > { %p19_p2 = scmp.ge.s32.totalorder %s22_s23, 4   ;;  %s988_s19 = smov %s761_s20 }
  0xb9   : > { %s989_s20 = smov %s894_s24  ;;  %s990_s21 = smov %s769_s22 }
  0xba   : > { %s991_s22 = smov %s993_s11  ;;  %21 = sbr.rel (!%p19_p2) target bundleno = 9 (0x9), region = 99 }
  0xbf   :  { %421 = vsyncpa [#allocation3], 1 }
  0xc0   :  { %423 = vsyncpa [#allocation3 + $0x1], 1 }
  0xc1   :  { %424 = vsyncpa [#allocation6], 1 }
  0xc2   :  { %425 = vsyncpa [#allocation4], 1 }
  0xc3   :  { %427 = vsyncpa [#allocation4 + $0x1], 1 }

</bundles_post_ra>
